<compile_context>
chip_gen: v7x
topology: tpu7x:2x2x1
jax: 0.10.0
libtpu: 0.0.40
codegen_flags: <defaults>
</compile_context>

<pallas_src>
import functools

import jax
import jax.numpy as jnp
from jax.experimental import pallas as pl
from jax.experimental.pallas import tpu as pltpu

LANE = 128        # vreg lane width (last dim)
ROW_ALIGN = 16    # sublane alignment satisfying both f32 (8) and bf16 (16) packing


def _round_up(x, m):
    return (x + m - 1) // m * m


def _fused_mlp_kernel(*refs, num_layers):
    """refs = (x_ref, w0, b0, w1, b1, ..., w_{L-1}, b_{L-1}, o_ref).

    x_ref: [TILE_R, pack*d_in]         activation tile (row-packed, lane-dense)
    w_i:   [pack*din_i, pack*dout_i]   block-diagonal weight, VMEM-resident
    b_i:   [1, pack*dout_i]            bias (f32), VMEM-resident
    o_ref: [TILE_R, pack*out_dim]
    """
    x_ref = refs[0]
    o_ref = refs[-1]

    h = x_ref[...]
    for i in range(num_layers):
        w_ref = refs[1 + 2 * i]
        b_ref = refs[2 + 2 * i]
        # MXU matmul with f32 accumulation; operands in the weight dtype (f32/bf16).
        y = jnp.dot(h.astype(w_ref.dtype), w_ref[...],
                    preferred_element_type=jnp.float32)
        # Epilogue (bias add + ReLU) in f32 -> cheap everywhere, exact on v5e.
        y = y + b_ref[...].astype(jnp.float32)
        if i < num_layers - 1:
            y = jnp.maximum(y, 0.0)
        h = y
    o_ref[...] = h.astype(o_ref.dtype)


def init_mlp_params(key, input_dim, hidden_dim, output_dim, num_layers):
    """Deterministic init matching the nn.Linear shapes of the PyTorch MLP."""
    h = [hidden_dim] * (num_layers - 1)
    params = []
    for n_in, n_out in zip([input_dim] + h, h + [output_dim]):
        key, kw, kb = jax.random.split(key, 3)
        bound = 1.0 / (n_in ** 0.5)
        w = jax.random.uniform(kw, (n_out, n_in), jnp.float32, -bound, bound)
        b = jax.random.uniform(kb, (n_out,), jnp.float32, -bound, bound)
        params.append((w, b))
    return params


def prepare_mlp_params(params, *, param_dtype=jnp.bfloat16,
                       max_packed_weight_bytes=16 * 1024 * 1024):
    """One-time param prep.

    Picks a row-packing factor `pack` (so `pack * output_dim` is lane-dense) and
    builds block-diagonal weights [pack*din, pack*dout] plus tiled f32 biases.
    With packing, `pack` consecutive logical rows travel in one 128-wide row, so
    input and output HBM traffic carries no padding bytes at all.  Weights stay
    tiny and VMEM-resident; `param_dtype=bf16` (default) is the recommended
    MXU path on v6e/v7x, f32 gives bit-tight results everywhere.
    """
    input_dim = params[0][0].shape[1]
    output_dim = params[-1][0].shape[0]

    # Packing factor: only when output_dim evenly divides a lane; fall back to 1.
    pack = LANE // output_dim if (output_dim < LANE and LANE % output_dim == 0) else 1

    # Block-diagonal weights grow as pack**2 -> cap the blow-up (irrelevant at
    # hidden=32, protects VMEM residency for large hidden dims).
    itemsize = jnp.dtype(param_dtype).itemsize

    def _packed_bytes(p):
        return sum((p * w.shape[1]) * (p * w.shape[0]) * itemsize for w, _ in params)

    while pack > 1 and _packed_bytes(pack) > max_packed_weight_bytes:
        pack //= 2

    # NOTE: within one packed row, a non-finite value in a sibling logical row
    # would propagate via 0*inf=NaN; identical to the reference for finite inputs.
    eye = jnp.eye(pack, dtype=jnp.float32)
    weights, biases = [], []
    for w, b in params:
        w_t = jnp.asarray(w, jnp.float32).T                     # [din, dout]
        wp = jnp.kron(eye, w_t).astype(param_dtype)             # [pack*din, pack*dout]
        bp = jnp.tile(jnp.asarray(b, jnp.float32).reshape(1, -1), (1, pack))  # f32
        weights.append(wp)
        biases.append(bp)

    return {
        "weights": weights,
        "biases": biases,
        "pack": pack,
        "input_dim": input_dim,
        "output_dim": output_dim,
        "act_dtype": param_dtype,
    }


def _choose_tile(n_rows, target_rows):
    """Packed-row tile: big enough to amortize per-grid-step overhead, but split
    into >= 2 blocks whenever possible so v7x's two TensorCores both get work."""
    if n_rows <= ROW_ALIGN:
        return max(n_rows, 1)                 # single block == full extent (legal)
    half = _round_up((n_rows + 1) // 2, ROW_ALIGN)
    return max(ROW_ALIGN, min(target_rows, half))


def mlp_forward(x, prepared, *, tile_packed_rows=None):
    """x: [..., input_dim] -> [..., output_dim]; whole MLP in one pallas_call."""
    weights = prepared["weights"]
    biases = prepared["biases"]
    pack = prepared["pack"]
    out_dim = prepared["output_dim"]
    num_layers = len(weights)

    lead = x.shape[:-1]
    x2d = x.reshape(-1, x.shape[-1])
    n, d_in = x2d.shape

    # Row-pack: [n, d_in] -> [n/pack, pack*d_in].  Pure row-major reshape; only
    # pads rows (same byte count, no feature inflation) when n % pack != 0.
    n_rows = _round_up(max(n, 1), pack)
    if n_rows != n:
        x2d = jnp.pad(x2d, ((0, n_rows - n), (0, 0)))
    x_packed = x2d.reshape(n_rows // pack, pack * d_in)
    n_packed, w_in = x_packed.shape
    w_out = weights[-1].shape[1]                     # pack * out_dim (lane-dense)

    itemsize_in = jnp.dtype(x.dtype).itemsize
    if tile_packed_rows is None:
        # ~512 KiB input blocks: measured mem-bound roofline ~63% -> ~86% when
        # moving from ~128 KiB to >=512 KiB blocks (per-step overhead amortized).
        tile_packed_rows = (512 * 1024) // max(1, w_in * itemsize_in)
    target_rows = _round_up(max(ROW_ALIGN, min(4096, tile_packed_rows)), ROW_ALIGN)
    tile_r = _choose_tile(n_packed, target_rows)
    grid = (pl.cdiv(n_packed, tile_r),)

    # Activation tile is strided over rows; weights/biases use constant index_maps
    # so they stay resident in VMEM for the whole grid.
    # NOTE: at large hidden dims one would add pipeline_mode=pl.Buffered(1) to the
    # resident weight/bias specs to drop their unused second buffer; negligible here.
    in_specs = [pl.BlockSpec((tile_r, w_in), lambda i: (i, 0))]
    args = [x_packed]
    for w, b in zip(weights, biases):
        in_specs.append(pl.BlockSpec(w.shape, lambda i: (0, 0)))
        in_specs.append(pl.BlockSpec(b.shape, lambda i: (0, 0)))
        args.append(w)
        args.append(b)

    out_dtype = x.dtype
    itemsize_out = jnp.dtype(out_dtype).itemsize

    # Right-size the VMEM request (double-buffered activation/output blocks +
    # resident weights/biases + f32 intermediates), clamp to [16 MiB, 48 MiB] so
    # it is safe on v7x (64 MiB physical) and leaves compiler headroom.
    max_width = max([w_in] + [w.shape[1] for w in weights])
    need = (2 * tile_r * w_in * itemsize_in
            + 2 * tile_r * w_out * itemsize_out
            + 2 * sum(int(w.size) * w.dtype.itemsize for w in weights)
            + 2 * sum(int(b.size) * b.dtype.itemsize for b in biases)
            + 2 * tile_r * max_width * 4)
    vmem_limit = int(min(max(2 * need, 16 * 1024 * 1024), 48 * 1024 * 1024))

    out = pl.pallas_call(
        functools.partial(_fused_mlp_kernel, num_layers=num_layers),
        out_shape=jax.ShapeDtypeStruct((n_packed, w_out), out_dtype),
        grid_spec=pl.GridSpec(
            grid=grid,
            in_specs=in_specs,
            out_specs=pl.BlockSpec((tile_r, w_out), lambda i: (i, 0)),
        ),
        compiler_params=pltpu.CompilerParams(
            dimension_semantics=("parallel",),   # megacore-shard row blocks (v7x)
            vmem_limit_bytes=vmem_limit,
        ),
    )(*args)

    # Unpack rows (free row-major reshape) and drop the row padding.
    out = out.reshape(n_rows, out_dim)[:n]
    return out.reshape(*lead, out_dim)


def _ref_forward(x, params):
    """Plain-JAX reference (same math as the PyTorch MLP.forward)."""
    lead = x.shape[:-1]
    h = x.reshape(-1, x.shape[-1])
    num_layers = len(params)
    for i, (w, b) in enumerate(params):
        h = h @ w.T + b
        if i < num_layers - 1:
            h = jnp.maximum(h, 0.0)
    return h.reshape(*lead, h.shape[-1])


if __name__ == "__main__":
    key = jax.random.PRNGKey(0)
    key, kx, kx2, kx3 = jax.random.split(key, 4)

    batch, seq = 2, 8
    input_dim, hidden_dim, output_dim, num_layers = 32, 32, 16, 3

    x = jax.random.normal(kx, (batch, seq, input_dim), jnp.float32)
    params = init_mlp_params(key, input_dim, hidden_dim, output_dim, num_layers)
    ref = _ref_forward(x, params)

    # f32 weights/activations (tight tolerance).
    prepared_f32 = prepare_mlp_params(params, param_dtype=jnp.float32)
    out = jax.block_until_ready(mlp_forward(x, prepared_f32))
    assert out.shape == (batch, seq, output_dim)
    assert jnp.allclose(out, ref, atol=1e-5, rtol=1e-5)

    # bf16 weights + in-kernel bf16 activations, f32 accumulation (v6e/v7x path).
    prepared_bf16 = prepare_mlp_params(params)          # default = bf16
    out_bf16 = jax.block_until_ready(mlp_forward(x, prepared_bf16))
    assert out_bf16.shape == (batch, seq, output_dim)
    assert jnp.allclose(out_bf16.astype(jnp.float32), ref, atol=1e-1, rtol=1e-1)

    # Multi-block grid (>= 2 blocks, partial last block) to exercise pipelining,
    # megacore sharding and boundary masking.
    x_big = jax.random.normal(kx2, (4, 300, input_dim), jnp.float32)
    ref_big = _ref_forward(x_big, params)
    out_big = jax.block_until_ready(mlp_forward(x_big, prepared_f32))
    assert out_big.shape == (4, 300, output_dim)
    assert jnp.allclose(out_big, ref_big, atol=1e-5, rtol=1e-5)

    # Row count not a multiple of the packing factor -> exercises the row-pad path.
    x_rag = jax.random.normal(kx3, (3, 7, input_dim), jnp.float32)
    ref_rag = _ref_forward(x_rag, params)
    out_rag = jax.block_until_ready(mlp_forward(x_rag, prepared_f32))
    assert out_rag.shape == (3, 7, output_dim)
    assert jnp.allclose(out_rag, ref_rag, atol=1e-5, rtol=1e-5)

    print("KERNEL_OK")
</pallas_src>

<mosaic_0001>
module attributes {stable_mosaic.version = 11 : i64} {
  func.func @_fused_mlp_kernel(%arg0: i32, %arg1: memref<2x256xf32, #tpu.memory_space<vmem>>, %arg2: memref<256x256xf32, #tpu.memory_space<vmem>>, %arg3: memref<1x256xf32, #tpu.memory_space<vmem>>, %arg4: memref<256x256xf32, #tpu.memory_space<vmem>>, %arg5: memref<1x256xf32, #tpu.memory_space<vmem>>, %arg6: memref<256x128xf32, #tpu.memory_space<vmem>>, %arg7: memref<1x128xf32, #tpu.memory_space<vmem>>, %arg8: memref<2x128xf32, #tpu.memory_space<vmem>>) attributes {dimension_semantics = [#tpu.dimension_semantics<parallel>], iteration_bounds = array<i64: 1>, scalar_prefetch = 0 : i64, scratch_operands = 0 : i64, tpu.core_type = #tpu.core_type<tc>, window_params = [{transform_indices = @transform_0, window_bounds = array<i64: 2, 256>}, {pipeline_mode = #tpu.pipeline_mode<synchronous>, transform_indices = @transform_1, window_bounds = array<i64: 256, 256>}, {pipeline_mode = #tpu.pipeline_mode<synchronous>, transform_indices = @transform_2, window_bounds = array<i64: 1, 256>}, {pipeline_mode = #tpu.pipeline_mode<synchronous>, transform_indices = @transform_3, window_bounds = array<i64: 256, 256>}, {pipeline_mode = #tpu.pipeline_mode<synchronous>, transform_indices = @transform_4, window_bounds = array<i64: 1, 256>}, {pipeline_mode = #tpu.pipeline_mode<synchronous>, transform_indices = @transform_5, window_bounds = array<i64: 256, 128>}, {pipeline_mode = #tpu.pipeline_mode<synchronous>, transform_indices = @transform_6, window_bounds = array<i64: 1, 128>}, {transform_indices = @transform_7, window_bounds = array<i64: 2, 128>}]} {
    %c0 = arith.constant 0 : index
    %c0_0 = arith.constant 0 : index
    %0 = vector.load %arg1[%c0, %c0_0] : memref<2x256xf32, #tpu.memory_space<vmem>>, vector<2x256xf32>
    %c0_1 = arith.constant 0 : index
    %c0_2 = arith.constant 0 : index
    %1 = vector.load %arg2[%c0_1, %c0_2] : memref<256x256xf32, #tpu.memory_space<vmem>>, vector<256x256xf32>
    %cst = arith.constant dense<0.000000e+00> : vector<2x256xf32>
    %2 = tpu.matmul %0, %1, %cst {dimension_numbers = #tpu.dot_dimension_numbers<[1], [0], [0], [1], [0, 0, 1, 1], [], []>} : vector<2x256xf32>, vector<256x256xf32>, vector<2x256xf32> -> vector<2x256xf32>
    %c0_3 = arith.constant 0 : index
    %c0_4 = arith.constant 0 : index
    %3 = vector.load %arg3[%c0_3, %c0_4] : memref<1x256xf32, #tpu.memory_space<vmem>>, vector<1x256xf32>
    %4 = vector.broadcast %3 : vector<1x256xf32> to vector<2x256xf32>
    %5 = arith.addf %2, %4 : vector<2x256xf32>
    %cst_5 = arith.constant 0.000000e+00 : f32
    %6 = vector.broadcast %cst_5 : f32 to vector<2x256xf32>
    %7 = arith.maximumf %5, %6 : vector<2x256xf32>
    %c0_6 = arith.constant 0 : index
    %c0_7 = arith.constant 0 : index
    %8 = vector.load %arg4[%c0_6, %c0_7] : memref<256x256xf32, #tpu.memory_space<vmem>>, vector<256x256xf32>
    %cst_8 = arith.constant dense<0.000000e+00> : vector<2x256xf32>
    %9 = tpu.matmul %7, %8, %cst_8 {dimension_numbers = #tpu.dot_dimension_numbers<[1], [0], [0], [1], [0, 0, 1, 1], [], []>} : vector<2x256xf32>, vector<256x256xf32>, vector<2x256xf32> -> vector<2x256xf32>
    %c0_9 = arith.constant 0 : index
    %c0_10 = arith.constant 0 : index
    %10 = vector.load %arg5[%c0_9, %c0_10] : memref<1x256xf32, #tpu.memory_space<vmem>>, vector<1x256xf32>
    %11 = vector.broadcast %10 : vector<1x256xf32> to vector<2x256xf32>
    %12 = arith.addf %9, %11 : vector<2x256xf32>
    %cst_11 = arith.constant 0.000000e+00 : f32
    %13 = vector.broadcast %cst_11 : f32 to vector<2x256xf32>
    %14 = arith.maximumf %12, %13 : vector<2x256xf32>
    %c0_12 = arith.constant 0 : index
    %c0_13 = arith.constant 0 : index
    %15 = vector.load %arg6[%c0_12, %c0_13] : memref<256x128xf32, #tpu.memory_space<vmem>>, vector<256x128xf32>
    %cst_14 = arith.constant dense<0.000000e+00> : vector<2x128xf32>
    %16 = tpu.matmul %14, %15, %cst_14 {dimension_numbers = #tpu.dot_dimension_numbers<[1], [0], [0], [1], [0, 0, 1, 1], [], []>} : vector<2x256xf32>, vector<256x128xf32>, vector<2x128xf32> -> vector<2x128xf32>
    %c0_15 = arith.constant 0 : index
    %c0_16 = arith.constant 0 : index
    %17 = vector.load %arg7[%c0_15, %c0_16] : memref<1x128xf32, #tpu.memory_space<vmem>>, vector<1x128xf32>
    %18 = vector.broadcast %17 : vector<1x128xf32> to vector<2x128xf32>
    %19 = arith.addf %16, %18 : vector<2x128xf32>
    %c0_17 = arith.constant 0 : index
    %c0_18 = arith.constant 0 : index
    %20 = vector.load %arg8[%c0_17, %c0_18] : memref<2x128xf32, #tpu.memory_space<vmem>>, vector<2x128xf32>
    tpu.vector_store %arg8[%c0_17, %c0_18], %19 {strides = array<i32>} : memref<2x128xf32, #tpu.memory_space<vmem>>, vector<2x128xf32>,
    return
  }
  func.func @transform_0(%arg0: i32) -> (i32, i32) {
    %c0_i32 = arith.constant 0 : i32
    %c0_i32_0 = arith.constant 0 : i32
    return %arg0, %c0_i32 : i32, i32
  }
  func.func @transform_1(%arg0: i32) -> (i32, i32) {
    %c0_i32 = arith.constant 0 : i32
    %c0_i32_0 = arith.constant 0 : i32
    %c0_i32_1 = arith.constant 0 : i32
    return %c0_i32, %c0_i32_0 : i32, i32
  }
  func.func @transform_2(%arg0: i32) -> (i32, i32) {
    %c0_i32 = arith.constant 0 : i32
    %c0_i32_0 = arith.constant 0 : i32
    %c0_i32_1 = arith.constant 0 : i32
    return %c0_i32, %c0_i32_0 : i32, i32
  }
  func.func @transform_3(%arg0: i32) -> (i32, i32) {
    %c0_i32 = arith.constant 0 : i32
    %c0_i32_0 = arith.constant 0 : i32
    %c0_i32_1 = arith.constant 0 : i32
    return %c0_i32, %c0_i32_0 : i32, i32
  }
  func.func @transform_4(%arg0: i32) -> (i32, i32) {
    %c0_i32 = arith.constant 0 : i32
    %c0_i32_0 = arith.constant 0 : i32
    %c0_i32_1 = arith.constant 0 : i32
    return %c0_i32, %c0_i32_0 : i32, i32
  }
  func.func @transform_5(%arg0: i32) -> (i32, i32) {
    %c0_i32 = arith.constant 0 : i32
    %c0_i32_0 = arith.constant 0 : i32
    %c0_i32_1 = arith.constant 0 : i32
    return %c0_i32, %c0_i32_0 : i32, i32
  }
  func.func @transform_6(%arg0: i32) -> (i32, i32) {
    %c0_i32 = arith.constant 0 : i32
    %c0_i32_0 = arith.constant 0 : i32
    %c0_i32_1 = arith.constant 0 : i32
    return %c0_i32, %c0_i32_0 : i32, i32
  }
  func.func @transform_7(%arg0: i32) -> (i32, i32) {
    %c0_i32 = arith.constant 0 : i32
    %c0_i32_0 = arith.constant 0 : i32
    return %arg0, %c0_i32 : i32, i32
  }
}

</mosaic_0001>

<bundles_post_ra>
// kernel: tpu_custom_call.1
= control target key start
LH: loop header
LB: loop body
LE: loop exit
PB: predicated region body
PF: predicated region fallthrough
CT: control target
= control target key end

     0   :  { %12 = vsyncpa [#allocation3], 0  ;;  %s970_s0 = inlined_call_operand.hbm [shape: f32[2,256], index: 0, kind: input, shape index: {}]   ;;  %s971_s1 = inlined_call_operand.hbm [shape: f32[256,256], index: 1, kind: input, shape index: {}]   ;;  %s972_s2 = inlined_call_operand.vmem [shape: f32[1,256], index: 2, kind: input, shape index: {}]   ;;  %s973_s3 = inlined_call_operand.hbm [shape: f32[256,256], index: 3, kind: input, shape index: {}]   ;;  %s974_s4 = inlined_call_operand.vmem [shape: f32[1,256], index: 4, kind: input, shape index: {}]   ;;  %s975_s5 = inlined_call_operand.hbm [shape: f32[256,128], index: 5, kind: input, shape index: {}]   ;;  %s976_s6 = inlined_call_operand.vmem [shape: f32[1,128], index: 6, kind: input, shape index: {}]   ;;  %s977_s7 = inlined_call_operand.hbm [shape: f32[2,128], index: 7, kind: output, shape index: {}]  }
   0x1   :  { %13 = vsyncpa [#allocation6], 0 }
   0x2   :  { %14 = vsyncpa [#allocation9], 0 }
   0x3   :  { %15 = vsyncpa [#allocation4], 0  ;;  %s841_s24 = smov [#allocation5]   ;;  %s723_s28 = scalar_lea.hbm %s971_s1, 8192 }
   0x4   :  { %s31_s25 = sshll.u32 %s841_s24, 4  ;;  %p724_p0 = scmp.ne.s32.totalorder %s971_s1, %s723_s28  ;;  %s32_s25 = int_to_ptr.vmem [resolvable:$true] %s31_s25 }
   0x5   :  { %p727_p1 = scmp.lt.u32.totalorder %s723_s28, %s971_s1 }
   0x7   :  { %p729_p2 = pnand %p727_p1, %p724_p0 }
   0x9   :  { %732 = shalt.err (!%p729_p2)
}
   0xa   :  { %s733_s10 = scalar_lea.vmem %s32_s25, 8192  ;;  %p738_p4 = scmp.lt.s32.totalorder %s32_s25, %s32_s25 }
   0xb   :  { %p734_p3 = scmp.ne.s32.totalorder %s32_s25, %s733_s10  ;;  %p739_p5 = scmp.lt.s32.totalorder %s733_s10, %s733_s10 }
   0xd   :  { %p740_p6 = por %p739_p5, %p738_p4 }
   0xf   :  { %p741_p7 = pnand %p740_p6, %p734_p3 }
  0x11   :  { %744 = shalt.err (!%p741_p7)
}
  0x12   :  { %s842_s11 = smov 256   ;;  %s843_s12 = smov 16  }
  0x13   :  { %37 = dma.hbm_to_vmem [thread:$0]  %s971_s1, 8192, %s32_s25, [#allocation6], %s842_s11, %s842_s11, %s843_s12  }
  0x14   :  { %s844_s15 = smov [#allocation2]   ;;  %s845_s17 = smov [#allocation7]  }
  0x15   :  { %s22_s16 = sshll.u32 %s844_s15, 4  ;;  %s45_s18 = sshll.u32 %s845_s17, 4  ;;  %s23_s16 = int_to_ptr.vmem [resolvable:$true] %s22_s16  ;;  %s46_s18 = int_to_ptr.vmem [resolvable:$true] %s45_s18 }
  0x16   :  { %s745_s21 = scalar_lea.hbm %s970_s0, 64 }
  0x17   :  { %p746_p8 = scmp.ne.s32.totalorder %s970_s0, %s745_s21  ;;  %p749_p9 = scmp.lt.u32.totalorder %s745_s21, %s970_s0 }
  0x19   :  { %p751_p10 = pnand %p749_p9, %p746_p8 }
  0x1b   :  { %754 = shalt.err (!%p751_p10)
}
  0x1c   :  { %s755_s1 = scalar_lea.vmem %s23_s16, 64  ;;  %p760_p12 = scmp.lt.s32.totalorder %s23_s16, %s23_s16 }
  0x1d   :  { %p756_p11 = scmp.ne.s32.totalorder %s23_s16, %s755_s1  ;;  %p761_p13 = scmp.lt.s32.totalorder %s755_s1, %s755_s1 }
  0x1f   :  { %p762_p0 = por %p761_p13, %p760_p12 }
  0x21   :  { %p763_p1 = pnand %p762_p0, %p756_p11 }
  0x23   :  { %766 = shalt.err (!%p763_p1)
}
  0x24   :  { %25 = dma.hbm_to_vmem [thread:$0]  %s970_s0, 64, %s23_s16, [#allocation3]  }
  0x25   :  { %s767_s30 = scalar_lea.hbm %s973_s3, 8192 }
  0x26   :  { %p768_p2 = scmp.ne.s32.totalorder %s973_s3, %s767_s30  ;;  %p771_p3 = scmp.lt.u32.totalorder %s767_s30, %s973_s3 }
  0x28   :  { %p773_p4 = pnand %p771_p3, %p768_p2 }
  0x2a   :  { %776 = shalt.err (!%p773_p4)
}
  0x2b   :  { %s777_s14 = scalar_lea.vmem %s46_s18, 8192  ;;  %p782_p6 = scmp.lt.s32.totalorder %s46_s18, %s46_s18 }
  0x2c   :  { %p778_p5 = scmp.ne.s32.totalorder %s46_s18, %s777_s14  ;;  %p783_p7 = scmp.lt.s32.totalorder %s777_s14, %s777_s14 }
  0x2e   :  { %p784_p8 = por %p783_p7, %p782_p6 }
  0x30   :  { %p785_p9 = pnand %p784_p8, %p778_p5 }
  0x32   :  { %788 = shalt.err (!%p785_p9)
}
  0x33   :  { %51 = dma.hbm_to_vmem [thread:$0]  %s973_s3, 8192, %s46_s18, [#allocation6], %s842_s11, %s842_s11, %s843_s12  }
  0x34   :  { %s846_s16 = smov [#allocation8]   ;;  %s789_s21 = scalar_lea.hbm %s975_s5, 4096 }
  0x35   :  { %s59_s17 = sshll.u32 %s846_s16, 4  ;;  %p790_p10 = scmp.ne.s32.totalorder %s975_s5, %s789_s21  ;;  %s60_s17 = int_to_ptr.vmem [resolvable:$true] %s59_s17 }
  0x36   :  { %p793_p11 = scmp.lt.u32.totalorder %s789_s21, %s975_s5 }
  0x38   :  { %p795_p12 = pnand %p793_p11, %p790_p10 }
  0x3a   :  { %798 = shalt.err (!%p795_p12)
}
  0x3b   :  { %s799_s1 = scalar_lea.vmem %s60_s17, 4096  ;;  %p804_p0 = scmp.lt.s32.totalorder %s60_s17, %s60_s17 }
  0x3c   :  { %p800_p13 = scmp.ne.s32.totalorder %s60_s17, %s799_s1  ;;  %p805_p1 = scmp.lt.s32.totalorder %s799_s1, %s799_s1 }
  0x3e   :  { %p806_p2 = por %p805_p1, %p804_p0 }
  0x40   :  { %p807_p3 = pnand %p806_p2, %p800_p13 }
  0x42   :  { %810 = shalt.err (!%p807_p3)
}
  0x43   :  { %s847_s3 = smov 128   ;;  %s848_s11 = smov 8  }
  0x44   :  { %65 = dma.hbm_to_vmem [thread:$0]  %s975_s5, 4096, %s60_s17, [#allocation9], %s847_s3, %s847_s3, %s848_s11  }
  0x45   :  { %833 = dma.done.wait [#allocation3], 64  }
  0x46   :  { %834 = vsyncadd [#allocation3], 4294967232 }
  0x47   :  { %835 = dma.done.wait [#allocation6], 16384  }
  0x48   :  { %836 = vsyncadd [#allocation6], 4294950912 }
  0x49   :  { %837 = dma.done.wait [#allocation9], 4096  }
  0x4a   :  { %838 = vsyncadd [#allocation9], 4294963200  ;;  %v82_v0 = vld [vmem:[#allocation5 + $0x8] sm:$0xff]  ;;  %v84_v1 = vld [vmem:[#allocation5 + $0x18] sm:$0xff]  ;;  %s849_s30 = smov [#allocation10]  }
  0x4b   :  { %v81_v2 = vld [vmem:[#allocation5] sm:$0xff]  ;;  %v554_v3 = vpack.c.bf16 %v84_v1, %v82_v0  ;;  %v83_v4 = vld [vmem:[#allocation5 + $0x10] sm:$0xff]  ;;  %v86_v5 = vld [vmem:[#allocation5 + $0x28] sm:$0xff]  ;;  %s506_s8 = sshll.u32 %s849_s30, 4  ;;  %s507_s8 = int_to_ptr.vmem [resolvable:$true] %s506_s8 }
  0x4c   :  { %v88_v6 = vld [vmem:[#allocation5 + $0x38] sm:$0xff]  ;;  %v556_v7 = vpack.c.bf16 %v83_v4, %v81_v2  ;;  %v85_v9 = vld [vmem:[#allocation5 + $0x20] sm:$0xff]  ;;  %v87_v10 = vld [vmem:[#allocation5 + $0x30] sm:$0xff]  ;;  %p816_p5 = scmp.lt.s32.totalorder %s507_s8, %s507_s8 }
  0x4d   :  { %v558_v8 = vpack.c.bf16 %v88_v6, %v86_v5  ;;  %v90_v11 = vld [vmem:[#allocation5 + $0x48] sm:$0xff]  ;;  %555 = vmatprep.subr.bf16.mxu0 %v554_v3  ;;  %v92_v12 = vld [vmem:[#allocation5 + $0x58] sm:$0xff]  ;;  %v560_v13 = vpack.c.bf16 %v87_v10, %v85_v9  ;;  %v89_v15 = vld [vmem:[#allocation5 + $0x40] sm:$0xff] }
  0x4e   :  { %557 = vmatpush1.bf16.msra.mxu0 %v556_v7  ;;  %v562_v14 = vpack.c.bf16 %v92_v12, %v90_v11  ;;  %v91_v16 = vld [vmem:[#allocation5 + $0x50] sm:$0xff]  ;;  %v94_v17 = vld [vmem:[#allocation5 + $0x68] sm:$0xff]  ;;  %v96_v18 = vld [vmem:[#allocation5 + $0x78] sm:$0xff] }
  0x4f   :  { %559 = vmatprep.subr.bf16.mxu0 %v558_v8  ;;  %v564_v19 = vpack.c.bf16 %v91_v16, %v89_v15  ;;  %v566_v20 = vpack.c.bf16 %v96_v18, %v94_v17  ;;  %v93_v21 = vld [vmem:[#allocation5 + $0x60] sm:$0xff]  ;;  %v95_v22 = vld [vmem:[#allocation5 + $0x70] sm:$0xff]  ;;  %v98_v23 = vld [vmem:[#allocation5 + $0x88] sm:$0xff] }
  0x50   :  { %v100_v24 = vld [vmem:[#allocation5 + $0x98] sm:$0xff]  ;;  %v568_v25 = vpack.c.bf16 %v95_v22, %v93_v21  ;;  %v97_v27 = vld [vmem:[#allocation5 + $0x80] sm:$0xff]  ;;  %v99_v28 = vld [vmem:[#allocation5 + $0x90] sm:$0xff] }
  0x51   :  { %v570_v26 = vpack.c.bf16 %v100_v24, %v98_v23  ;;  %v102_v29 = vld [vmem:[#allocation5 + $0xa8] sm:$0xff]  ;;  %v104_v30 = vld [vmem:[#allocation5 + $0xb8] sm:$0xff]  ;;  %v572_v31 = vpack.c.bf16 %v99_v28, %v97_v27  ;;  %v101_v33 = vld [vmem:[#allocation5 + $0xa0] sm:$0xff] }
  0x52   :  { %561 = vmatpush1.bf16.msra.mxu0 %v560_v13  ;;  %v574_v32 = vpack.c.bf16 %v104_v30, %v102_v29  ;;  %v103_v34 = vld [vmem:[#allocation5 + $0xb0] sm:$0xff]  ;;  %v106_v35 = vld [vmem:[#allocation5 + $0xc8] sm:$0xff]  ;;  %v108_v36 = vld [vmem:[#allocation5 + $0xd8] sm:$0xff] }
  0x53   :  { %563 = vmatprep.subr.bf16.mxu0 %v562_v14  ;;  %v576_v37 = vpack.c.bf16 %v103_v34, %v101_v33  ;;  %v105_v38 = vld [vmem:[#allocation5 + $0xc0] sm:$0xff]  ;;  %v107_v39 = vld [vmem:[#allocation5 + $0xd0] sm:$0xff]  ;;  %v110_v40 = vld [vmem:[#allocation5 + $0xe8] sm:$0xff]  ;;  %v578_v41 = vpack.c.bf16 %v108_v36, %v106_v35 }
  0x54   :  { %v112_v42 = vld [vmem:[#allocation5 + $0xf8] sm:$0xff]  ;;  %v242_v44 = vld [vmem:[#allocation7 + $0x8] sm:$0xff]  ;;  %v241_v47 = vld [vmem:[#allocation7] sm:$0xff]  ;;  %v580_v54 = vpack.c.bf16 %v107_v39, %v105_v38 }
  0x55   :  { %v944_v43 = vld.sshfl [vmem:[#allocation2] sm:$0x33 pattern:$0x76325410]  ;;  %v243_v48 = vld [vmem:[#allocation7 + $0x10] sm:$0xff]  ;;  %v246_v51 = vld [vmem:[#allocation7 + $0x28] sm:$0xff]  ;;  %v582_v59 = vpack.c.bf16 %v112_v42, %v110_v40 }
  0x56   :  { %565 = vmatpush1.bf16.msra.mxu0 %v564_v19  ;;  %v165_v45 = vcombine.high %v944_v43, %v944_v43  ;;  %v244_v46 = vld [vmem:[#allocation7 + $0x18] sm:$0xff]  ;;  %v620_v50 = vpack.c.bf16 %v243_v48, %v241_v47  ;;  %v245_v53 = vld [vmem:[#allocation7 + $0x20] sm:$0xff]  ;;  %v247_v56 = vld [vmem:[#allocation7 + $0x30] sm:$0xff] }
  0x57   :  { %567 = vmatprep.subr.bf16.mxu0 %v566_v20  ;;  %v618_v49 = vpack.c.bf16 %v244_v46, %v242_v44  ;;  %v248_v52 = vld [vmem:[#allocation7 + $0x38] sm:$0xff]  ;;  %v250_v57 = vld [vmem:[#allocation7 + $0x48] sm:$0xff]  ;;  %v109_v60 = vld [vmem:[#allocation5 + $0xe0] sm:$0xff]  ;;  %v624_v0 = vpack.c.bf16 %v247_v56, %v245_v53 }
  0x58   :  { %232 = vmatprep.mubr.f32.mxu0 %v165_v45  ;;  %v622_v55 = vpack.c.bf16 %v248_v52, %v246_v51  ;;  %v252_v58 = vld [vmem:[#allocation7 + $0x58] sm:$0xff]  ;;  %v111_v61 = vld [vmem:[#allocation5 + $0xf0] sm:$0xff]  ;;  %v114_v62 = vld [vmem:[#allocation5 + $0x108] sm:$0xff] }
  0x59   :  { %619 = vmatprep.subr.bf16.mxu1 %v618_v49  ;;  %v116_v63 = vld [vmem:[#allocation5 + $0x118] sm:$0xff]  ;;  %v626_v1 = vpack.c.bf16 %v252_v58, %v250_v57  ;;  %v249_v2 = vld [vmem:[#allocation7 + $0x40] sm:$0xff]  ;;  %v251_v3 = vld [vmem:[#allocation7 + $0x50] sm:$0xff]  ;;  %v584_v4 = vpack.c.bf16 %v111_v61, %v109_v60 }
  0x5a   :  { %569 = vmatpush1.bf16.msra.mxu0 %v568_v25  ;;  %621 = vmatpush1.bf16.msra.mxu1 %v620_v50  ;;  %v254_v5 = vld [vmem:[#allocation7 + $0x68] sm:$0xff]  ;;  %v256_v6 = vld [vmem:[#allocation7 + $0x78] sm:$0xff]  ;;  %v586_v7 = vpack.c.bf16 %v116_v63, %v114_v62  ;;  %v113_v8 = vld [vmem:[#allocation5 + $0x100] sm:$0xff]  ;;  %v628_v12 = vpack.c.bf16 %v251_v3, %v249_v2 }
  0x5b   :  { %571 = vmatprep.subr.bf16.mxu0 %v570_v26  ;;  %623 = vmatprep.subr.bf16.mxu1 %v622_v55  ;;  %v115_v9 = vld [vmem:[#allocation5 + $0x110] sm:$0xff]  ;;  %v118_v10 = vld [vmem:[#allocation5 + $0x128] sm:$0xff]  ;;  %v120_v11 = vld [vmem:[#allocation5 + $0x138] sm:$0xff]  ;;  %v630_v13 = vpack.c.bf16 %v256_v6, %v254_v5 }
  0x5c   :  { %v253_v14 = vld [vmem:[#allocation7 + $0x60] sm:$0xff]  ;;  %v255_v15 = vld [vmem:[#allocation7 + $0x70] sm:$0xff]  ;;  %v588_v16 = vpack.c.bf16 %v115_v9, %v113_v8  ;;  %v258_v17 = vld [vmem:[#allocation7 + $0x88] sm:$0xff]  ;;  %v590_v19 = vpack.c.bf16 %v120_v11, %v118_v10 }
  0x5d   :  { %v260_v18 = vld [vmem:[#allocation7 + $0x98] sm:$0xff]  ;;  %v117_v20 = vld [vmem:[#allocation5 + $0x120] sm:$0xff]  ;;  %v119_v21 = vld [vmem:[#allocation5 + $0x130] sm:$0xff]  ;;  %v632_v24 = vpack.c.bf16 %v255_v15, %v253_v14 }
  0x5e   :  { %573 = vmatpush1.bf16.msra.mxu0 %v572_v31  ;;  %625 = vmatpush1.bf16.msra.mxu1 %v624_v0  ;;  %v122_v22 = vld [vmem:[#allocation5 + $0x148] sm:$0xff]  ;;  %v124_v23 = vld [vmem:[#allocation5 + $0x158] sm:$0xff]  ;;  %v634_v25 = vpack.c.bf16 %v260_v18, %v258_v17  ;;  %v257_v26 = vld [vmem:[#allocation7 + $0x80] sm:$0xff]  ;;  %v592_v28 = vpack.c.bf16 %v119_v21, %v117_v20 }
  0x5f   :  { %575 = vmatprep.subr.bf16.mxu0 %v574_v32  ;;  %627 = vmatprep.subr.bf16.mxu1 %v626_v1  ;;  %v259_v27 = vld [vmem:[#allocation7 + $0x90] sm:$0xff]  ;;  %v262_v29 = vld [vmem:[#allocation7 + $0xa8] sm:$0xff]  ;;  %v264_v30 = vld [vmem:[#allocation7 + $0xb8] sm:$0xff]  ;;  %v594_v31 = vpack.c.bf16 %v124_v23, %v122_v22 }
  0x60   :  { %v121_v32 = vld [vmem:[#allocation5 + $0x140] sm:$0xff]  ;;  %v123_v33 = vld [vmem:[#allocation5 + $0x150] sm:$0xff]  ;;  %v126_v34 = vld [vmem:[#allocation5 + $0x168] sm:$0xff]  ;;  %v636_v36 = vpack.c.bf16 %v259_v27, %v257_v26 }
  0x61   :  { %v128_v35 = vld [vmem:[#allocation5 + $0x178] sm:$0xff]  ;;  %v261_v38 = vld [vmem:[#allocation7 + $0xa0] sm:$0xff]  ;;  %v263_v39 = vld [vmem:[#allocation7 + $0xb0] sm:$0xff]  ;;  %v596_v40 = vpack.c.bf16 %v123_v33, %v121_v32 }
  0x62   :  { %577 = vmatpush1.bf16.msra.mxu0 %v576_v37  ;;  %629 = vmatpush1.bf16.msra.mxu1 %v628_v12  ;;  %v638_v37 = vpack.c.bf16 %v264_v30, %v262_v29  ;;  %v268_v42 = vld [vmem:[#allocation7 + $0xd8] sm:$0xff]  ;;  %v598_v44 = vpack.c.bf16 %v128_v35, %v126_v34  ;;  %v125_v45 = vld [vmem:[#allocation5 + $0x160] sm:$0xff]  ;;  %v127_v46 = vld [vmem:[#allocation5 + $0x170] sm:$0xff]  ;;  %v640_v49 = vpack.c.bf16 %v263_v39, %v261_v38 }
  0x63   :  { %579 = vmatprep.subr.bf16.mxu0 %v578_v41  ;;  %631 = vmatprep.subr.bf16.mxu1 %v630_v13  ;;  %v266_v41 = vld [vmem:[#allocation7 + $0xc8] sm:$0xff]  ;;  %v132_v48 = vld [vmem:[#allocation5 + $0x198] sm:$0xff]  ;;  %v265_v51 = vld [vmem:[#allocation7 + $0xc0] sm:$0xff]  ;;  %v600_v53 = vpack.c.bf16 %v127_v46, %v125_v45 }
  0x64   :  { %v130_v47 = vld [vmem:[#allocation5 + $0x188] sm:$0xff]  ;;  %v642_v50 = vpack.c.bf16 %v268_v42, %v266_v41  ;;  %v267_v52 = vld [vmem:[#allocation7 + $0xd0] sm:$0xff]  ;;  %v272_v55 = vld [vmem:[#allocation7 + $0xf8] sm:$0xff] }
  0x65   :  { %v602_v56 = vpack.c.bf16 %v132_v48, %v130_v47  ;;  %v129_v57 = vld [vmem:[#allocation5 + $0x180] sm:$0xff]  ;;  %v131_v58 = vld [vmem:[#allocation5 + $0x190] sm:$0xff]  ;;  %v136_v60 = vld [vmem:[#allocation5 + $0x1b8] sm:$0xff]  ;;  %v644_v61 = vpack.c.bf16 %v267_v52, %v265_v51 }
  0x66   :  { %581 = vmatpush1.bf16.msra.mxu0 %v580_v54  ;;  %633 = vmatpush1.bf16.msra.mxu1 %v632_v24  ;;  %v270_v54 = vld [vmem:[#allocation7 + $0xe8] sm:$0xff]  ;;  %v269_v63 = vld [vmem:[#allocation7 + $0xe0] sm:$0xff]  ;;  %v271_v0 = vld [vmem:[#allocation7 + $0xf0] sm:$0xff]  ;;  %v604_v1 = vpack.c.bf16 %v131_v58, %v129_v57 }
  0x67   :  { %583 = vmatprep.subr.bf16.mxu0 %v582_v59  ;;  %635 = vmatprep.subr.bf16.mxu1 %v634_v25  ;;  %v134_v59 = vld [vmem:[#allocation5 + $0x1a8] sm:$0xff]  ;;  %v646_v62 = vpack.c.bf16 %v272_v55, %v270_v54  ;;  %v276_v3 = vld [vmem:[#allocation7 + $0x118] sm:$0xff]  ;;  %v133_v5 = vld [vmem:[#allocation5 + $0x1a0] sm:$0xff]  ;;  %v648_v9 = vpack.c.bf16 %v271_v0, %v269_v63 }
  0x68   :  { %v274_v2 = vld [vmem:[#allocation7 + $0x108] sm:$0xff]  ;;  %v135_v6 = vld [vmem:[#allocation5 + $0x1b0] sm:$0xff]  ;;  %v140_v8 = vld [vmem:[#allocation5 + $0x1d8] sm:$0xff] }
  0x69   :  { %v650_v10 = vpack.c.bf16 %v276_v3, %v274_v2  ;;  %v273_v11 = vld [vmem:[#allocation7 + $0x100] sm:$0xff]  ;;  %v275_v12 = vld [vmem:[#allocation7 + $0x110] sm:$0xff]  ;;  %v608_v13 = vpack.c.bf16 %v135_v6, %v133_v5  ;;  %v278_v14 = vld [vmem:[#allocation7 + $0x128] sm:$0xff] }
  0x6a   :  { %585 = vmatpush1.bf16.msra.mxu0 %v584_v4  ;;  %637 = vmatpush1.bf16.msra.mxu1 %v636_v36  ;;  %v606_v4 = vpack.c.bf16 %v136_v60, %v134_v59  ;;  %v280_v15 = vld [vmem:[#allocation7 + $0x138] sm:$0xff]  ;;  %v137_v17 = vld [vmem:[#allocation5 + $0x1c0] sm:$0xff]  ;;  %v139_v18 = vld [vmem:[#allocation5 + $0x1d0] sm:$0xff]  ;;  %v652_v21 = vpack.c.bf16 %v275_v12, %v273_v11 }
  0x6b   :  { %587 = vmatprep.subr.bf16.mxu0 %v586_v7  ;;  %639 = vmatprep.subr.bf16.mxu1 %v638_v37  ;;  %v138_v7 = vld [vmem:[#allocation5 + $0x1c8] sm:$0xff]  ;;  %v144_v20 = vld [vmem:[#allocation5 + $0x1f8] sm:$0xff]  ;;  %v654_v22 = vpack.c.bf16 %v280_v15, %v278_v14  ;;  %v277_v23 = vld [vmem:[#allocation7 + $0x120] sm:$0xff]  ;;  %v612_v25 = vpack.c.bf16 %v139_v18, %v137_v17 }
  0x6c   :  { %v279_v24 = vld [vmem:[#allocation7 + $0x130] sm:$0xff]  ;;  %v282_v26 = vld [vmem:[#allocation7 + $0x148] sm:$0xff]  ;;  %v284_v27 = vld [vmem:[#allocation7 + $0x158] sm:$0xff] }
  0x6d   :  { %v141_v29 = vld [vmem:[#allocation5 + $0x1e0] sm:$0xff]  ;;  %v143_v30 = vld [vmem:[#allocation5 + $0x1f0] sm:$0xff]  ;;  %v658_v32 = vpack.c.bf16 %v284_v27, %v282_v26  ;;  %v286_v36 = vld [vmem:[#allocation7 + $0x168] sm:$0xff] }
  0x6e   :  { %589 = vmatpush1.bf16.msra.mxu0 %v588_v16  ;;  %641 = vmatpush1.bf16.msra.mxu1 %v640_v49  ;;  %v610_v16 = vpack.c.bf16 %v140_v8, %v138_v7  ;;  %v281_v33 = vld [vmem:[#allocation7 + $0x140] sm:$0xff]  ;;  %v283_v34 = vld [vmem:[#allocation7 + $0x150] sm:$0xff]  ;;  %v616_v35 = vpack.c.bf16 %v143_v30, %v141_v29  ;;  %v288_v37 = vld [vmem:[#allocation7 + $0x178] sm:$0xff] }
  0x6f   :  { %591 = vmatprep.subr.bf16.mxu0 %v590_v19  ;;  %643 = vmatprep.subr.bf16.mxu1 %v642_v50  ;;  %v142_v19 = vld [vmem:[#allocation5 + $0x1e8] sm:$0xff]  ;;  %v660_v38 = vpack.c.bf16 %v283_v34, %v281_v33  ;;  %v662_v39 = vpack.c.bf16 %v288_v37, %v286_v36  ;;  %v287_v41 = vld [vmem:[#allocation7 + $0x170] sm:$0xff]  ;;  %v289_v47 = vld [vmem:[#allocation7 + $0x180] sm:$0xff] }
  0x70   :  { %v290_v42 = vld [vmem:[#allocation7 + $0x188] sm:$0xff]  ;;  %v291_v48 = vld [vmem:[#allocation7 + $0x190] sm:$0xff]  ;;  %v296_v50 = vld [vmem:[#allocation7 + $0x1b8] sm:$0xff] }
  0x71   :  { %v294_v49 = vld [vmem:[#allocation7 + $0x1a8] sm:$0xff]  ;;  %v668_v51 = vpack.c.bf16 %v291_v48, %v289_v47  ;;  %v295_v54 = vld [vmem:[#allocation7 + $0x1b0] sm:$0xff]  ;;  %v301_v0 = vld [vmem:[#allocation7 + $0x1e0] sm:$0xff] }
  0x72   :  { %593 = vmatpush1.bf16.msra.mxu0 %v592_v28  ;;  %645 = vmatpush1.bf16.msra.mxu1 %v644_v61  ;;  %v614_v28 = vpack.c.bf16 %v144_v20, %v142_v19  ;;  %v670_v52 = vpack.c.bf16 %v296_v50, %v294_v49  ;;  %v298_v55 = vld [vmem:[#allocation7 + $0x1c8] sm:$0xff]  ;;  %v299_v59 = vld [vmem:[#allocation7 + $0x1d0] sm:$0xff]  ;;  %v406_v3 = vld [vmem:[#allocation8 + $0x80] sm:$0xff] }
  0x73   :  { %595 = vmatprep.subr.bf16.mxu0 %v594_v31  ;;  %647 = vmatprep.subr.bf16.mxu1 %v646_v62  ;;  %v656_v31 = vpack.c.bf16 %v279_v24, %v277_v23  ;;  %v302_v61 = vld [vmem:[#allocation7 + $0x1e8] sm:$0xff]  ;;  %v304_v62 = vld [vmem:[#allocation7 + $0x1f8] sm:$0xff]  ;;  %v390_v5 = vld [vmem:[#allocation8] sm:$0xff] }
  0x74   :  { %v678_v63 = vpack.c.bf16 %v304_v62, %v302_v61  ;;  %v391_v7 = vld [vmem:[#allocation8 + $0x8] sm:$0xff]  ;;  %v408_v8 = vld [vmem:[#allocation8 + $0x90] sm:$0xff]  ;;  %v410_v14 = vld [vmem:[#allocation8 + $0xa0] sm:$0xff] }
  0x75   :  { %v392_v12 = vld [vmem:[#allocation8 + $0x10] sm:$0xff]  ;;  %v411_v15 = vld [vmem:[#allocation8 + $0xa8] sm:$0xff]  ;;  %v394_v18 = vld [vmem:[#allocation8 + $0x20] sm:$0xff] }
  0x76   :  { %597 = vmatpush1.bf16.msra.mxu0 %v596_v40  ;;  %649 = vmatpush1.bf16.msra.mxu1 %v648_v9  ;;  %v285_v40 = vld [vmem:[#allocation7 + $0x160] sm:$0xff]  ;;  %v409_v9 = vld [vmem:[#allocation8 + $0x98] sm:$0xff]  ;;  %v690_v17 = vpack.c.bf16 %v411_v15, %v410_v14  ;;  %v395_v19 = vld [vmem:[#allocation8 + $0x28] sm:$0xff] }
  0x77   :  { %599 = vmatprep.subr.bf16.mxu0 %v598_v44  ;;  %651 = vmatprep.subr.bf16.mxu1 %v650_v10  ;;  %v292_v44 = vld [vmem:[#allocation7 + $0x198] sm:$0xff]  ;;  %v664_v45 = vpack.c.bf16 %v287_v41, %v285_v40  ;;  %v684_v10 = vpack.c.bf16 %v391_v7, %v390_v5  ;;  %v686_v11 = vpack.c.bf16 %v409_v9, %v408_v8  ;;  %v412_v20 = vld [vmem:[#allocation8 + $0xb0] sm:$0xff]  ;;  %v414_v26 = vld [vmem:[#allocation8 + $0xc0] sm:$0xff] }
  0x78   :  { %v666_v46 = vpack.c.bf16 %v292_v44, %v290_v42  ;;  %v396_v24 = vld [vmem:[#allocation8 + $0x30] sm:$0xff]  ;;  %v415_v27 = vld [vmem:[#allocation8 + $0xc8] sm:$0xff]  ;;  %v398_v30 = vld [vmem:[#allocation8 + $0x40] sm:$0xff]  ;;  %v147_v42 = vlaneseq }
  0x79   :  { %v698_v29 = vpack.c.bf16 %v415_v27, %v414_v26  ;;  %v417_v33 = vld [vmem:[#allocation8 + $0xd8] sm:$0xff]  ;;  %v400_v36 = vld [vmem:[#allocation8 + $0x50] sm:$0xff] }
  0x7a   :  { %601 = vmatpush1.bf16.msra.mxu0 %v600_v53  ;;  %653 = vmatpush1.bf16.msra.mxu1 %v652_v21  ;;  %v293_v53 = vld [vmem:[#allocation7 + $0x1a0] sm:$0xff]  ;;  %v413_v21 = vld [vmem:[#allocation8 + $0xb8] sm:$0xff]  ;;  %v148_v44 = vshrl.u32 %v147_v42, 7  ;;  %v404_v61 = vld [vmem:[#allocation8 + $0x70] sm:$0xff] }
  0x7b   :  { %603 = vmatprep.subr.bf16.mxu0 %v602_v56  ;;  %655 = vmatprep.subr.bf16.mxu1 %v654_v22  ;;  %v300_v56 = vld [vmem:[#allocation7 + $0x1d8] sm:$0xff]  ;;  %v672_v57 = vpack.c.bf16 %v295_v54, %v293_v53  ;;  %v692_v22 = vpack.c.bf16 %v395_v19, %v394_v18  ;;  %v694_v23 = vpack.c.bf16 %v413_v21, %v412_v20 }
  0x7c   :  { %v674_v58 = vpack.c.bf16 %v300_v56, %v298_v55  ;;  %v401_v37 = vld [vmem:[#allocation8 + $0x58] sm:$0xff]  ;;  %v153_v47 = vsub.s32 1, %v148_v44  ;;  %v402_v56 = vld [vmem:[#allocation8 + $0x60] sm:$0xff] }
  0x7d   :  { %v704_v40 = vpack.c.bf16 %v401_v37, %v400_v36  ;;  %v405_v62 = vld [vmem:[#allocation8 + $0x78] sm:$0xff] }
  0x7e   :  { %605 = vmatpush1.bf16.msra.mxu0 %v604_v1  ;;  %657 = vmatpush1.bf16.msra.mxu1 %v656_v31  ;;  %v303_v1 = vld [vmem:[#allocation7 + $0x1f0] sm:$0xff]  ;;  %v399_v31 = vld [vmem:[#allocation8 + $0x48] sm:$0xff] }
  0x7f   :  { %607 = vmatprep.subr.bf16.mxu0 %v606_v4  ;;  %659 = vmatprep.subr.bf16.mxu1 %v658_v32  ;;  %v680_v2 = vpack.c.bf16 %v303_v1, %v301_v0  ;;  %v407_v4 = vld [vmem:[#allocation8 + $0x88] sm:$0xff]  ;;  %v416_v32 = vld [vmem:[#allocation8 + $0xd0] sm:$0xff]  ;;  %v700_v34 = vpack.c.bf16 %v399_v31, %v398_v30  ;;  %v305_v0 = vld [vmem:[%s974_s4] sm:$0x3]  ;;  %s811_s4 = scalar_lea.vmem %s507_s8, 32 }
  0x80   :  { %v682_v6 = vpack.c.bf16 %v407_v4, %v406_v3  ;;  %p812_p4 = scmp.ne.s32.totalorder %s507_s8, %s811_s4  ;;  %p817_p6 = scmp.lt.s32.totalorder %s811_s4, %s811_s4 }
  0x82   :  { %609 = vmatpush1.bf16.msra.mxu0 %v608_v13  ;;  %661 = vmatpush1.bf16.msra.mxu1 %v660_v38  ;;  %v393_v13 = vld [vmem:[#allocation8 + $0x18] sm:$0xff]  ;;  %v418_v38 = vld [vmem:[#allocation8 + $0xe0] sm:$0xff]  ;;  %p818_p7 = por %p817_p6, %p816_p5 }
  0x83   :  { %611 = vmatprep.subr.bf16.mxu0 %v610_v16  ;;  %663 = vmatprep.subr.bf16.mxu1 %v662_v39  ;;  %v688_v16 = vpack.c.bf16 %v393_v13, %v392_v12  ;;  %v419_v39 = vld [vmem:[#allocation8 + $0xe8] sm:$0xff] }
  0x84   :  { %v706_v41 = vpack.c.bf16 %v419_v39, %v418_v38  ;;  %p819_p8 = pnand %p818_p7, %p812_p4 }
  0x86   :  { %613 = vmatpush1.bf16.msra.mxu0 %v612_v25  ;;  %665 = vmatpush1.bf16.msra.mxu1 %v664_v45  ;;  %v397_v25 = vld [vmem:[#allocation8 + $0x38] sm:$0xff]  ;;  %v149_v45 = vsub.s32 0, %v148_v44 }
  0x87   :  { %615 = vmatprep.subr.bf16.mxu0 %v614_v28  ;;  %667 = vmatprep.subr.bf16.mxu1 %v666_v46  ;;  %v696_v28 = vpack.c.bf16 %v397_v25, %v396_v24  ;;  %v145_v46 = vld [vmem:[%s972_s2] sm:$0x3] }
  0x88   :  { %v150_v48 = vrot.slane %v145_v46, %v149_v45  ;;  %v154_v49 = vrot.slane %v145_v46, %v153_v47  ;;  %v310_v1 = vrot.slane %v305_v0, %v149_v45 }
  0x8a   :  { %617 = vmatpush1.bf16.msra.mxu0 %v616_v35  ;;  %669 = vmatpush1.bf16.msra.mxu1 %v668_v51  ;;  %v702_v35 = vpack.c.bf16 %v417_v33, %v416_v32 }
  0x8b   :  { %671 = vmatprep.subr.bf16.mxu1 %v670_v52  ;;  %683 = vmatprep.subr.bf16.mxu0 %v682_v6 }
  0x8d   :  { %233 = vmatmul.mubr.f32.vlgmr.msra.gmra.mrb[0].mxu0 %v944_v43  ;;  %v297_v43 = vld [vmem:[#allocation7 + $0x1c0] sm:$0xff] }
  0x8e   :  { %673 = vmatpush1.bf16.msra.mxu1 %v672_v57  ;;  %v676_v60 = vpack.c.bf16 %v299_v59, %v297_v43  ;;  %685 = vmatpush3.bf16.msra.mxu0 %v684_v10  ;;  %v403_v57 = vld [vmem:[#allocation8 + $0x68] sm:$0xff]  ;;  %v420_v43 = vld [vmem:[#allocation8 + $0xf0] sm:$0xff]  ;;  %v421_v59 = vld [vmem:[#allocation8 + $0xf8] sm:$0xff] }
  0x8f   :  { %675 = vmatprep.subr.bf16.mxu1 %v674_v58  ;;  %687 = vmatprep.subr.bf16.mxu0 %v686_v11  ;;  %v708_v58 = vpack.c.bf16 %v403_v57, %v402_v56  ;;  %v518_v10 = vld [vmem:[%s976_s6] ss:$0 sm:$0xff] }
  0x92   :  { %677 = vmatpush1.bf16.msra.mxu1 %v676_v60  ;;  %689 = vmatpush3.bf16.msra.mxu0 %v688_v16  ;;  %v710_v60 = vpack.c.bf16 %v421_v59, %v420_v43 }
  0x93   :  { %679 = vmatprep.subr.bf16.mxu1 %v678_v63  ;;  %691 = vmatprep.subr.bf16.mxu0 %v690_v17  ;;  %v712_v63 = vpack.c.bf16 %v405_v62, %v404_v61 }
  0x96   :  { %681 = vmatpush1.bf16.msra.mxu1 %v680_v2  ;;  %693 = vmatpush3.bf16.msra.mxu0 %v692_v22  ;;  %v314_v2 = vrot.slane %v305_v0, %v153_v47 }
  0x97   :  { %695 = vmatprep.subr.bf16.mxu0 %v694_v23 }
  0x9a   :  { %697 = vmatpush3.bf16.msra.mxu0 %v696_v28 }
  0x9b   :  { %699 = vmatprep.subr.bf16.mxu0 %v698_v29 }
  0x9e   :  { %701 = vmatpush3.bf16.msra.mxu0 %v700_v34 }
  0x9f   :  { %703 = vmatprep.subr.bf16.mxu0 %v702_v35 }
  0xa2   :  { %705 = vmatpush3.bf16.msra.mxu0 %v704_v40 }
  0xa3   :  { %707 = vmatprep.subr.bf16.mxu0 %v706_v41 }
  0xa6   :  { %709 = vmatpush3.bf16.msra.mxu0 %v708_v58 }
  0xa7   :  { %711 = vmatprep.subr.bf16.mxu0 %v710_v60 }
  0xaa   :  { %713 = vmatpush3.bf16.msra.mxu0 %v712_v63 }
 0x160   :  { %v234_v50 = vpop.f32.mrb[0].mxu0 }
 0x161   :  { %v235_v51 = vadd.f32 %v234_v50, %v150_v48  ;;  %v236_v52 = vpop.f32.mrb[1].mxu0 }
 0x162   :  { %v237_v53 = vadd.f32 %v236_v52, %v154_v49 }
 0x163   :  { %v239_v55 = vmax.f32 %v235_v51, 0.0 }
 0x164   :  { %v240_v54 = vmax.f32 %v237_v53, 0.0 }
 0x166   :  { %381 = vmatprep.mubr.f32.mxu1 %v240_v54 }
 0x167   :  { %382 = vmatmul.mubr.f32.vlgmr.msra.gmra.mrb[0].mxu1 %v239_v55 }
 0x23a   :  { %v383_v3 = vpop.f32.mrb[0].mxu1 }
 0x23b   :  { %v384_v4 = vadd.f32 %v383_v3, %v310_v1  ;;  %v385_v5 = vpop.f32.mrb[1].mxu1 }
 0x23c   :  { %v386_v6 = vadd.f32 %v385_v5, %v314_v2 }
 0x23d   :  { %v388_v8 = vmax.f32 %v384_v4, 0.0 }
 0x23e   :  { %v389_v7 = vmax.f32 %v386_v6, 0.0 }
 0x240   :  { %493 = vmatprep.mubr.f32.mxu0 %v389_v7 }
 0x241   :  { %494 = vmatmul.mubr.f32.vlgmr.msra.gmra.mrb[2].mxu0 %v388_v8 }
 0x314   :  { %v551_v9 = vpop.f32.mrb[2].mxu0 }
 0x315   :  { %v552_v11 = vpop.f32.mrb[3].mxu0 }
 0x316   :  { %v553_v12 = vadd.f32 %v552_v11, %v551_v9 }
 0x318   :  { %v496_v13 = vadd.f32 %v553_v12, %v518_v10 }
 0x31a   :  { %499 = vst [vmem:[#allocation10] sm:$0x3] %v496_v13 }
 0x31b   :  { %822 = shalt.err (!%p819_p8)
}
 0x31c   :  { %s823_s13 = scalar_lea.hbm %s977_s7, 32 }
 0x31d   :  { %p824_p9 = scmp.ne.s32.totalorder %s977_s7, %s823_s13  ;;  %p827_p10 = scmp.lt.u32.totalorder %s823_s13, %s977_s7 }
 0x31f   :  { %p829_p11 = pnand %p827_p10, %p824_p9 }
 0x321   :  { %832 = shalt.err (!%p829_p11)
}
 0x322   :  { %509 = dma.vmem_to_hbm [thread:$0]  %s507_s8, 32, %s977_s7, [#allocation4]  }
 0x323   :  { %839 = dma.done.wait [#allocation4], 32  }
 0x324   :  { %840 = vsyncadd [#allocation4], 4294967264 }
 0x325   :  { %513 = vsyncpa [#allocation3], 1 }
 0x326   :  { %514 = vsyncpa [#allocation6], 1 }
 0x327   :  { %515 = vsyncpa [#allocation9], 1 }
 0x328   :  { %516 = vsyncpa [#allocation4], 1 }

</bundles_post_ra>
